<compile_context>
chip_gen: v6e
topology: v6e:2x2x1
jax: 0.10.0
libtpu: 0.0.40
codegen_flags: <defaults>
</compile_context>

<pallas_src>
import jax
import jax.numpy as jnp
from jax.experimental import pallas as pl
from jax.experimental.pallas import tpu as pltpu

TIMESTEPS = 1000
BETA_START = 1e-4
BETA_END = 0.02
LN_EPS = 1e-5

# ---- diffusion schedule hoisted out of the per-call path (torch.linspace /
# ---- cumprod semantics) ----------------------------------------------------
_BETAS = jnp.linspace(BETA_START, BETA_END, TIMESTEPS, dtype=jnp.float32)
_ALPHA_BAR = jnp.cumprod(1.0 - _BETAS)
_SQRT_AB = jnp.sqrt(_ALPHA_BAR)
_SQRT_1MAB = jnp.sqrt(1.0 - _ALPHA_BAR)


def _diffusion_kernel(sa_smem, so_smem,                      # scalar prefetch (SMEM)
                      x0_ref, noise_ref,                     # activations (VMEM)
                      wqkv_ref, wo_ref, w1_ref, w2_ref,      # bf16 weights (VMEM)
                      vec_ref,                               # packed LN/bias vectors
                      out_ref):
    """One batch tile per grid step: q_sample + full transformer block."""
    BT, S, D = x0_ref.shape
    H = w1_ref.shape[1]
    M = BT * S
    tile = pl.program_id(0)
    bf16 = jnp.bfloat16
    f32 = jnp.float32

    # ---- q_sample: x_t = sqrt(abar_t) * x_0 + sqrt(1 - abar_t) * noise ------
    # Per-batch scalars from SMEM -> (BT,1,1) scale vectors -> one whole-block
    # broadcasted FMA (no per-batch loop, no concatenate copies).
    sa = jnp.stack([sa_smem[tile * BT + b] for b in range(BT)]).reshape(BT, 1, 1)
    so = jnp.stack([so_smem[tile * BT + b] for b in range(BT)]).reshape(BT, 1, 1)
    xt = sa * x0_ref[...] + so * noise_ref[...]                     # (BT,S,D) f32
    x2d = xt.reshape(M, D)                                          # sublane-aligned fold
    x2d_b = x2d.astype(bf16)

    # ---- fused QKV projection (1/sqrt(D) folded into Wq at init) ------------
    qkv = jnp.dot(x2d_b, wqkv_ref[...], preferred_element_type=f32)  # (M, 3D)
    # D % 128 == 0 -> these lane slices are vreg-aligned (free).
    q = qkv[:, 0:D].astype(bf16).reshape(BT, S, D)
    k = qkv[:, D:2 * D].astype(bf16).reshape(BT, S, D)
    v = qkv[:, 2 * D:3 * D].astype(bf16).reshape(BT, S, D)

    # ---- single-head self-attention (batched; contracts k's last axis) ------
    sc = jnp.einsum('bqd,bkd->bqk', q, k, preferred_element_type=f32)  # (BT,S,S)
    m = jnp.max(sc, axis=-1, keepdims=True)
    p = jnp.exp(sc - m)
    p = p * pl.reciprocal(jnp.sum(p, axis=-1, keepdims=True), approx=True)
    attn = jnp.einsum('bqk,bkd->bqd', p.astype(bf16), v,
                      preferred_element_type=f32)                    # (BT,S,D)
    attn_out = jnp.dot(attn.reshape(M, D).astype(bf16), wo_ref[...],
                       preferred_element_type=f32)                   # (M,D)

    # ---- residual + LayerNorm 1 (f32 VPU path) ------------------------------
    g1 = vec_ref[0, 0:D]
    b1 = vec_ref[1, 0:D]
    h = x2d + attn_out
    mu = jnp.mean(h, axis=-1, keepdims=True)
    var = jnp.mean((h - mu) ** 2, axis=-1, keepdims=True)
    h_ln = (h - mu) * jax.lax.rsqrt(var + LN_EPS) * g1 + b1

    # ---- MLP (D -> H -> D) with GELU ----------------------------------------
    bm1 = vec_ref[2, :]                                              # (H,)
    bm2 = vec_ref[3, 0:D]
    ff = jnp.dot(h_ln.astype(bf16), w1_ref[...], preferred_element_type=f32) + bm1
    ff = jax.nn.gelu(ff, approximate=True)   # tanh GELU (EUP); exact-erf would differ
    ff = jnp.dot(ff.astype(bf16), w2_ref[...], preferred_element_type=f32) + bm2

    # ---- residual + LayerNorm 2 ---------------------------------------------
    g2 = vec_ref[4, 0:D]
    b2 = vec_ref[5, 0:D]
    y = h_ln + ff
    mu2 = jnp.mean(y, axis=-1, keepdims=True)
    var2 = jnp.mean((y - mu2) ** 2, axis=-1, keepdims=True)
    y_ln = (y - mu2) * jax.lax.rsqrt(var2 + LN_EPS) * g2 + b2

    # Single lane-dense store (D is a multiple of 128 -> unmasked vst).
    out_ref[...] = y_ln.reshape(BT, S, D).astype(out_ref.dtype)


def _default_batch_tile(B):
    """B//2 on 2-TensorCore chips (v7x) so the parallel grid axis uses both cores."""
    try:
        kind = jax.devices()[0].device_kind.lower()
    except Exception:
        kind = ""
    if ("v7" in kind or "7x" in kind) and B % 2 == 0:
        return B // 2
    return B


def diffusion_forward(x_0, t, noise, params, *, batch_tile=None):
    """Per-batch diffusion scales via SMEM scalar prefetch + one fused Pallas call."""
    B, S, D = x_0.shape
    H = params["w1"].shape[1]
    # Lane-dense output stores and vreg-aligned QKV slices require D % 128 == 0;
    # MLP width must be MXU/lane aligned and >= D for the packed-vector layout.
    assert D % 128 == 0 and S % 8 == 0, "use D multiple of 128, S multiple of 8"
    assert H % 128 == 0 and H >= D

    BT = _default_batch_tile(B) if batch_tile is None else batch_tile
    assert B % BT == 0

    sqrt_ab = _SQRT_AB[t].astype(jnp.float32)        # (B,) SMEM scalar prefetch
    sqrt_1mab = _SQRT_1MAB[t].astype(jnp.float32)    # (B,) SMEM scalar prefetch

    # index_maps receive the scalar-prefetch refs as trailing positional args.
    act_spec = pl.BlockSpec((BT, S, D), lambda i, sa, so: (i, 0, 0))
    wqkv_spec = pl.BlockSpec((D, 3 * D), lambda i, sa, so: (0, 0))
    wo_spec = pl.BlockSpec((D, D), lambda i, sa, so: (0, 0))
    w1_spec = pl.BlockSpec((D, H), lambda i, sa, so: (0, 0))
    w2_spec = pl.BlockSpec((H, D), lambda i, sa, so: (0, 0))
    vec_spec = pl.BlockSpec((6, H), lambda i, sa, so: (0, 0))

    grid_spec = pltpu.PrefetchScalarGridSpec(
        num_scalar_prefetch=2,
        grid=(B // BT,),
        in_specs=[
            act_spec, act_spec,                  # x_0, noise
            wqkv_spec, wo_spec,                  # fused QKV, Wo   (bf16)
            w1_spec, w2_spec,                    # MLP weights     (bf16)
            vec_spec,                            # packed LN gammas/betas + MLP biases
        ],
        out_specs=act_spec,
    )

    fn = pl.pallas_call(
        _diffusion_kernel,
        out_shape=jax.ShapeDtypeStruct((B, S, D), jnp.float32),
        grid_spec=grid_spec,
        compiler_params=pltpu.CompilerParams(
            dimension_semantics=("parallel",),
            vmem_limit_bytes=32 * 1024 * 1024),
    )

    return fn(
        sqrt_ab, sqrt_1mab,
        x_0.astype(jnp.float32), noise.astype(jnp.float32),
        params["wqkv"], params["wo"], params["w1"], params["w2"],
        params["vecs"],
    )


def init_params(key, D, H):
    """Deterministic toy transformer weights, packed + bf16-cast once at init."""
    ks = jax.random.split(key, 6)
    s = 0.02
    wq = s * jax.random.normal(ks[0], (D, D), dtype=jnp.float32)
    wk = s * jax.random.normal(ks[1], (D, D), dtype=jnp.float32)
    wv = s * jax.random.normal(ks[2], (D, D), dtype=jnp.float32)
    wo = s * jax.random.normal(ks[3], (D, D), dtype=jnp.float32)
    w1 = s * jax.random.normal(ks[4], (D, H), dtype=jnp.float32)
    w2 = s * jax.random.normal(ks[5], (H, D), dtype=jnp.float32)

    # Fold the 1/sqrt(D) attention scale into Wq; fuse Q|K|V along the output dim.
    wq = wq * (1.0 / (D ** 0.5))
    wqkv = jnp.concatenate([wq, wk, wv], axis=1)                 # (D, 3D)

    # Pack the six LN/bias vectors into one (6, H) f32 array
    # rows: [ln1 gamma, ln1 beta, mlp bias1 (H-wide), mlp bias2, ln2 gamma, ln2 beta]
    def pad_d(v):
        return jnp.pad(v, (0, H - v.shape[0]))
    vecs = jnp.stack([
        pad_d(jnp.ones((D,), jnp.float32)),     # g1
        pad_d(jnp.zeros((D,), jnp.float32)),    # b1
        jnp.zeros((H,), jnp.float32),            # bm1
        pad_d(jnp.zeros((D,), jnp.float32)),    # bm2
        pad_d(jnp.ones((D,), jnp.float32)),     # g2
        pad_d(jnp.zeros((D,), jnp.float32)),    # b2
    ])

    return {
        "wqkv": wqkv.astype(jnp.bfloat16),
        "wo": wo.astype(jnp.bfloat16),
        "w1": w1.astype(jnp.bfloat16),
        "w2": w2.astype(jnp.bfloat16),
        "vecs": vecs,                            # f32 (VPU add/scale path)
    }


if __name__ == "__main__":
    # Small demo shapes; D kept a multiple of 128 for lane-dense stores and
    # MXU-aligned matmuls (per perf review).
    B, S, D, H = 2, 8, 128, 256

    key = jax.random.PRNGKey(0)
    k_x, k_t, k_n, k_p = jax.random.split(key, 4)

    x_0 = jax.random.normal(k_x, (B, S, D), dtype=jnp.float32)
    t = jax.random.randint(k_t, (B,), 0, TIMESTEPS)      # per-batch timestep
    noise = jax.random.normal(k_n, (B, S, D), dtype=jnp.float32)
    params = init_params(k_p, D, H)

    # TODO(synk): t/noise are sampled host-side (jax.random) for determinism; an
    # in-kernel pltpu.prng_seed + pltpu.stateful_normal draw would remove the
    # (B,S,D) noise DMA entirely.
    noise_pred = diffusion_forward(x_0, t, noise, params)
    jax.block_until_ready(noise_pred)

    assert noise_pred.shape == (B, S, D)
    assert noise_pred.dtype == jnp.float32
    print("KERNEL_OK")
</pallas_src>

<mosaic_0001>
module attributes {stable_mosaic.version = 11 : i64} {
  func.func @_diffusion_kernel(%arg0: i32, %arg1: memref<2xf32, #tpu.memory_space<smem>>, %arg2: memref<2xf32, #tpu.memory_space<smem>>, %arg3: memref<2x8x128xf32, #tpu.memory_space<vmem>>, %arg4: memref<2x8x128xf32, #tpu.memory_space<vmem>>, %arg5: memref<128x384xbf16, #tpu.memory_space<vmem>>, %arg6: memref<128x128xbf16, #tpu.memory_space<vmem>>, %arg7: memref<128x256xbf16, #tpu.memory_space<vmem>>, %arg8: memref<256x128xbf16, #tpu.memory_space<vmem>>, %arg9: memref<6x256xf32, #tpu.memory_space<vmem>>, %arg10: memref<2x8x128xf32, #tpu.memory_space<vmem>>) attributes {dimension_semantics = [#tpu.dimension_semantics<parallel>], iteration_bounds = array<i64: 1>, scalar_prefetch = 2 : i64, scratch_operands = 0 : i64, tpu.core_type = #tpu.core_type<tc>, window_params = [{transform_indices = @transform_0, window_bounds = array<i64: 2, 8, 128>}, {transform_indices = @transform_1, window_bounds = array<i64: 2, 8, 128>}, {pipeline_mode = #tpu.pipeline_mode<synchronous>, transform_indices = @transform_2, window_bounds = array<i64: 128, 384>}, {pipeline_mode = #tpu.pipeline_mode<synchronous>, transform_indices = @transform_3, window_bounds = array<i64: 128, 128>}, {pipeline_mode = #tpu.pipeline_mode<synchronous>, transform_indices = @transform_4, window_bounds = array<i64: 128, 256>}, {pipeline_mode = #tpu.pipeline_mode<synchronous>, transform_indices = @transform_5, window_bounds = array<i64: 256, 128>}, {pipeline_mode = #tpu.pipeline_mode<synchronous>, transform_indices = @transform_6, window_bounds = array<i64: 6, 256>}, {transform_indices = @transform_7, window_bounds = array<i64: 2, 8, 128>}]} {
    %c2_i32 = arith.constant 2 : i32
    %0 = arith.muli %arg0, %c2_i32 : i32
    %c0_i32 = arith.constant 0 : i32
    %1 = arith.addi %0, %c0_i32 : i32
    %2 = arith.index_cast %1 : i32 to index
    %3 = memref.load %arg1[%2] : memref<2xf32, #tpu.memory_space<smem>>
    %c2_i32_0 = arith.constant 2 : i32
    %4 = arith.muli %arg0, %c2_i32_0 : i32
    %c1_i32 = arith.constant 1 : i32
    %5 = arith.addi %4, %c1_i32 : i32
    %6 = arith.index_cast %5 : i32 to index
    %7 = memref.load %arg1[%6] : memref<2xf32, #tpu.memory_space<smem>>
    %8 = vector.broadcast %3 : f32 to vector<1xf32>
    %9 = vector.broadcast %7 : f32 to vector<1xf32>
    %10 = tpu.concatenate %8, %9 in 0 : vector<1xf32>, vector<1xf32> -> vector<2xf32>
    %11 = vector.shape_cast %10 : vector<2xf32> to vector<2x1x1xf32>
    %c2_i32_1 = arith.constant 2 : i32
    %12 = arith.muli %arg0, %c2_i32_1 : i32
    %c0_i32_2 = arith.constant 0 : i32
    %13 = arith.addi %12, %c0_i32_2 : i32
    %14 = arith.index_cast %13 : i32 to index
    %15 = memref.load %arg2[%14] : memref<2xf32, #tpu.memory_space<smem>>
    %c2_i32_3 = arith.constant 2 : i32
    %16 = arith.muli %arg0, %c2_i32_3 : i32
    %c1_i32_4 = arith.constant 1 : i32
    %17 = arith.addi %16, %c1_i32_4 : i32
    %18 = arith.index_cast %17 : i32 to index
    %19 = memref.load %arg2[%18] : memref<2xf32, #tpu.memory_space<smem>>
    %20 = vector.broadcast %15 : f32 to vector<1xf32>
    %21 = vector.broadcast %19 : f32 to vector<1xf32>
    %22 = tpu.concatenate %20, %21 in 0 : vector<1xf32>, vector<1xf32> -> vector<2xf32>
    %23 = vector.shape_cast %22 : vector<2xf32> to vector<2x1x1xf32>
    %c0 = arith.constant 0 : index
    %c0_5 = arith.constant 0 : index
    %c0_6 = arith.constant 0 : index
    %24 = vector.load %arg3[%c0, %c0_5, %c0_6] : memref<2x8x128xf32, #tpu.memory_space<vmem>>, vector<2x8x128xf32>
    %25 = vector.broadcast %11 : vector<2x1x1xf32> to vector<2x8x128xf32>
    %26 = arith.mulf %25, %24 : vector<2x8x128xf32>
    %c0_7 = arith.constant 0 : index
    %c0_8 = arith.constant 0 : index
    %c0_9 = arith.constant 0 : index
    %27 = vector.load %arg4[%c0_7, %c0_8, %c0_9] : memref<2x8x128xf32, #tpu.memory_space<vmem>>, vector<2x8x128xf32>
    %28 = vector.broadcast %23 : vector<2x1x1xf32> to vector<2x8x128xf32>
    %29 = arith.mulf %28, %27 : vector<2x8x128xf32>
    %30 = arith.addf %26, %29 : vector<2x8x128xf32>
    %31 = vector.shape_cast %30 : vector<2x8x128xf32> to vector<16x128xf32>
    %32 = arith.truncf %31 : vector<16x128xf32> to vector<16x128xbf16>
    %c0_10 = arith.constant 0 : index
    %c0_11 = arith.constant 0 : index
    %33 = vector.load %arg5[%c0_10, %c0_11] : memref<128x384xbf16, #tpu.memory_space<vmem>>, vector<128x384xbf16>
    %cst = arith.constant dense<0.000000e+00> : vector<16x384xf32>
    %34 = tpu.matmul %32, %33, %cst {dimension_numbers = #tpu.dot_dimension_numbers<[1], [0], [0], [1], [0, 0, 1, 1], [], []>} : vector<16x128xbf16>, vector<128x384xbf16>, vector<16x384xf32> -> vector<16x384xf32>
    %35 = vector.extract_strided_slice %34 {offsets = [0, 0], sizes = [16, 128], strides = [1, 1]} : vector<16x384xf32> to vector<16x128xf32>
    %36 = arith.truncf %35 : vector<16x128xf32> to vector<16x128xbf16>
    %37 = vector.shape_cast %36 : vector<16x128xbf16> to vector<2x8x128xbf16>
    %38 = vector.extract_strided_slice %34 {offsets = [0, 128], sizes = [16, 128], strides = [1, 1]} : vector<16x384xf32> to vector<16x128xf32>
    %39 = arith.truncf %38 : vector<16x128xf32> to vector<16x128xbf16>
    %40 = vector.shape_cast %39 : vector<16x128xbf16> to vector<2x8x128xbf16>
    %41 = vector.extract_strided_slice %34 {offsets = [0, 256], sizes = [16, 128], strides = [1, 1]} : vector<16x384xf32> to vector<16x128xf32>
    %42 = arith.truncf %41 : vector<16x128xf32> to vector<16x128xbf16>
    %43 = vector.shape_cast %42 : vector<16x128xbf16> to vector<2x8x128xbf16>
    "tpu.trace_start"() <{level = 10 : i32, message = "bqd,bkd->bqk"}> : () -> ()
    %cst_12 = arith.constant dense<0.000000e+00> : vector<2x8x8xf32>
    %44 = tpu.matmul %37, %40, %cst_12 {dimension_numbers = #tpu.dot_dimension_numbers<[2], [2], [1], [1], [0, 0, 0, 1, 1, 1], [0], [0]>} : vector<2x8x128xbf16>, vector<2x8x128xbf16>, vector<2x8x8xf32> -> vector<2x8x8xf32>
    "tpu.trace_stop"() : () -> ()
    %cst_13 = arith.constant dense<0xFF800000> : vector<2x8xf32>
    %45 = vector.multi_reduction <maximumf>, %44, %cst_13 [2] : vector<2x8x8xf32> to vector<2x8xf32>
    %46 = vector.shape_cast %45 : vector<2x8xf32> to vector<2x8x1xf32>
    %47 = vector.broadcast %46 : vector<2x8x1xf32> to vector<2x8x8xf32>
    %48 = arith.subf %44, %47 : vector<2x8x8xf32>
    %49 = math.exp %48 : vector<2x8x8xf32>
    %cst_14 = arith.constant dense<0.000000e+00> : vector<2x8xf32>
    %50 = vector.multi_reduction <add>, %49, %cst_14 [2] : vector<2x8x8xf32> to vector<2x8xf32>
    %51 = vector.shape_cast %50 : vector<2x8xf32> to vector<2x8x1xf32>
    %52 = tpu.reciprocal %51 {approx = true} : vector<2x8x1xf32> -> vector<2x8x1xf32>
    %53 = vector.broadcast %52 : vector<2x8x1xf32> to vector<2x8x8xf32>
    %54 = arith.mulf %49, %53 : vector<2x8x8xf32>
    %55 = arith.truncf %54 : vector<2x8x8xf32> to vector<2x8x8xbf16>
    "tpu.trace_start"() <{level = 10 : i32, message = "bqk,bkd->bqd"}> : () -> ()
    %cst_15 = arith.constant dense<0.000000e+00> : vector<2x8x128xf32>
    %56 = tpu.matmul %55, %43, %cst_15 {dimension_numbers = #tpu.dot_dimension_numbers<[2], [1], [1], [2], [0, 0, 0, 1, 1, 2], [0], [0]>} : vector<2x8x8xbf16>, vector<2x8x128xbf16>, vector<2x8x128xf32> -> vector<2x8x128xf32>
    "tpu.trace_stop"() : () -> ()
    %57 = vector.shape_cast %56 : vector<2x8x128xf32> to vector<16x128xf32>
    %58 = arith.truncf %57 : vector<16x128xf32> to vector<16x128xbf16>
    %c0_16 = arith.constant 0 : index
    %c0_17 = arith.constant 0 : index
    %59 = vector.load %arg6[%c0_16, %c0_17] : memref<128x128xbf16, #tpu.memory_space<vmem>>, vector<128x128xbf16>
    %cst_18 = arith.constant dense<0.000000e+00> : vector<16x128xf32>
    %60 = tpu.matmul %58, %59, %cst_18 {dimension_numbers = #tpu.dot_dimension_numbers<[1], [0], [0], [1], [0, 0, 1, 1], [], []>} : vector<16x128xbf16>, vector<128x128xbf16>, vector<16x128xf32> -> vector<16x128xf32>
    %c0_19 = arith.constant 0 : index
    %c0_20 = arith.constant 0 : index
    %61 = vector.load %arg9[%c0_19, %c0_20] : memref<6x256xf32, #tpu.memory_space<vmem>>, vector<1x128xf32>
    %62 = vector.shape_cast %61 : vector<1x128xf32> to vector<128xf32>
    %c1 = arith.constant 1 : index
    %c0_21 = arith.constant 0 : index
    %63 = vector.load %arg9[%c1, %c0_21] : memref<6x256xf32, #tpu.memory_space<vmem>>, vector<1x128xf32>
    %64 = vector.shape_cast %63 : vector<1x128xf32> to vector<128xf32>
    %65 = arith.addf %31, %60 : vector<16x128xf32>
    %cst_22 = arith.constant dense<0.000000e+00> : vector<16xf32>
    %66 = vector.multi_reduction <add>, %65, %cst_22 [1] : vector<16x128xf32> to vector<16xf32>
    %67 = vector.shape_cast %66 : vector<16xf32> to vector<16x1xf32>
    %cst_23 = arith.constant 1.280000e+02 : f32
    %68 = vector.broadcast %cst_23 : f32 to vector<16x1xf32>
    %69 = arith.divf %67, %68 : vector<16x1xf32>
    %70 = vector.broadcast %69 : vector<16x1xf32> to vector<16x128xf32>
    %71 = arith.subf %65, %70 : vector<16x128xf32>
    %72 = arith.mulf %71, %71 : vector<16x128xf32>
    %cst_24 = arith.constant dense<0.000000e+00> : vector<16xf32>
    %73 = vector.multi_reduction <add>, %72, %cst_24 [1] : vector<16x128xf32> to vector<16xf32>
    %74 = vector.shape_cast %73 : vector<16xf32> to vector<16x1xf32>
    %cst_25 = arith.constant 1.280000e+02 : f32
    %75 = vector.broadcast %cst_25 : f32 to vector<16x1xf32>
    %76 = arith.divf %74, %75 : vector<16x1xf32>
    %77 = vector.broadcast %69 : vector<16x1xf32> to vector<16x128xf32>
    %78 = arith.subf %65, %77 : vector<16x128xf32>
    %cst_26 = arith.constant 9.99999974E-6 : f32
    %79 = vector.broadcast %cst_26 : f32 to vector<16x1xf32>
    %80 = arith.addf %76, %79 : vector<16x1xf32>
    %81 = math.rsqrt %80 : vector<16x1xf32>
    %82 = vector.broadcast %81 : vector<16x1xf32> to vector<16x128xf32>
    %83 = arith.mulf %78, %82 : vector<16x128xf32>
    %84 = vector.shape_cast %62 : vector<128xf32> to vector<1x128xf32>
    %85 = vector.broadcast %84 : vector<1x128xf32> to vector<16x128xf32>
    %86 = arith.mulf %83, %85 : vector<16x128xf32>
    %87 = vector.shape_cast %64 : vector<128xf32> to vector<1x128xf32>
    %88 = vector.broadcast %87 : vector<1x128xf32> to vector<16x128xf32>
    %89 = arith.addf %86, %88 : vector<16x128xf32>
    %c2 = arith.constant 2 : index
    %c0_27 = arith.constant 0 : index
    %90 = vector.load %arg9[%c2, %c0_27] : memref<6x256xf32, #tpu.memory_space<vmem>>, vector<1x256xf32>
    %91 = vector.shape_cast %90 : vector<1x256xf32> to vector<256xf32>
    %c3 = arith.constant 3 : index
    %c0_28 = arith.constant 0 : index
    %92 = vector.load %arg9[%c3, %c0_28] : memref<6x256xf32, #tpu.memory_space<vmem>>, vector<1x128xf32>
    %93 = vector.shape_cast %92 : vector<1x128xf32> to vector<128xf32>
    %94 = arith.truncf %89 : vector<16x128xf32> to vector<16x128xbf16>
    %c0_29 = arith.constant 0 : index
    %c0_30 = arith.constant 0 : index
    %95 = vector.load %arg7[%c0_29, %c0_30] : memref<128x256xbf16, #tpu.memory_space<vmem>>, vector<128x256xbf16>
    %cst_31 = arith.constant dense<0.000000e+00> : vector<16x256xf32>
    %96 = tpu.matmul %94, %95, %cst_31 {dimension_numbers = #tpu.dot_dimension_numbers<[1], [0], [0], [1], [0, 0, 1, 1], [], []>} : vector<16x128xbf16>, vector<128x256xbf16>, vector<16x256xf32> -> vector<16x256xf32>
    %97 = vector.shape_cast %91 : vector<256xf32> to vector<1x256xf32>
    %98 = vector.broadcast %97 : vector<1x256xf32> to vector<16x256xf32>
    %99 = arith.addf %96, %98 : vector<16x256xf32>
    %100 = arith.mulf %99, %99 : vector<16x256xf32>
    %101 = arith.mulf %99, %100 : vector<16x256xf32>
    %cst_32 = arith.constant 4.471500e-02 : f32
    %102 = vector.broadcast %cst_32 : f32 to vector<16x256xf32>
    %103 = arith.mulf %102, %101 : vector<16x256xf32>
    %104 = arith.addf %99, %103 : vector<16x256xf32>
    %cst_33 = arith.constant 0.797884583 : f32
    %105 = vector.broadcast %cst_33 : f32 to vector<16x256xf32>
    %106 = arith.mulf %105, %104 : vector<16x256xf32>
    %107 = math.tanh %106 : vector<16x256xf32>
    %cst_34 = arith.constant 1.000000e+00 : f32
    %108 = vector.broadcast %cst_34 : f32 to vector<16x256xf32>
    %109 = arith.addf %108, %107 : vector<16x256xf32>
    %cst_35 = arith.constant 5.000000e-01 : f32
    %110 = vector.broadcast %cst_35 : f32 to vector<16x256xf32>
    %111 = arith.mulf %110, %109 : vector<16x256xf32>
    %112 = arith.mulf %99, %111 : vector<16x256xf32>
    %113 = arith.truncf %112 : vector<16x256xf32> to vector<16x256xbf16>
    %c0_36 = arith.constant 0 : index
    %c0_37 = arith.constant 0 : index
    %114 = vector.load %arg8[%c0_36, %c0_37] : memref<256x128xbf16, #tpu.memory_space<vmem>>, vector<256x128xbf16>
    %cst_38 = arith.constant dense<0.000000e+00> : vector<16x128xf32>
    %115 = tpu.matmul %113, %114, %cst_38 {dimension_numbers = #tpu.dot_dimension_numbers<[1], [0], [0], [1], [0, 0, 1, 1], [], []>} : vector<16x256xbf16>, vector<256x128xbf16>, vector<16x128xf32> -> vector<16x128xf32>
    %116 = vector.shape_cast %93 : vector<128xf32> to vector<1x128xf32>
    %117 = vector.broadcast %116 : vector<1x128xf32> to vector<16x128xf32>
    %118 = arith.addf %115, %117 : vector<16x128xf32>
    %c4 = arith.constant 4 : index
    %c0_39 = arith.constant 0 : index
    %119 = vector.load %arg9[%c4, %c0_39] : memref<6x256xf32, #tpu.memory_space<vmem>>, vector<1x128xf32>
    %120 = vector.shape_cast %119 : vector<1x128xf32> to vector<128xf32>
    %c5 = arith.constant 5 : index
    %c0_40 = arith.constant 0 : index
    %121 = vector.load %arg9[%c5, %c0_40] : memref<6x256xf32, #tpu.memory_space<vmem>>, vector<1x128xf32>
    %122 = vector.shape_cast %121 : vector<1x128xf32> to vector<128xf32>
    %123 = arith.addf %89, %118 : vector<16x128xf32>
    %cst_41 = arith.constant dense<0.000000e+00> : vector<16xf32>
    %124 = vector.multi_reduction <add>, %123, %cst_41 [1] : vector<16x128xf32> to vector<16xf32>
    %125 = vector.shape_cast %124 : vector<16xf32> to vector<16x1xf32>
    %cst_42 = arith.constant 1.280000e+02 : f32
    %126 = vector.broadcast %cst_42 : f32 to vector<16x1xf32>
    %127 = arith.divf %125, %126 : vector<16x1xf32>
    %128 = vector.broadcast %127 : vector<16x1xf32> to vector<16x128xf32>
    %129 = arith.subf %123, %128 : vector<16x128xf32>
    %130 = arith.mulf %129, %129 : vector<16x128xf32>
    %cst_43 = arith.constant dense<0.000000e+00> : vector<16xf32>
    %131 = vector.multi_reduction <add>, %130, %cst_43 [1] : vector<16x128xf32> to vector<16xf32>
    %132 = vector.shape_cast %131 : vector<16xf32> to vector<16x1xf32>
    %cst_44 = arith.constant 1.280000e+02 : f32
    %133 = vector.broadcast %cst_44 : f32 to vector<16x1xf32>
    %134 = arith.divf %132, %133 : vector<16x1xf32>
    %135 = vector.broadcast %127 : vector<16x1xf32> to vector<16x128xf32>
    %136 = arith.subf %123, %135 : vector<16x128xf32>
    %cst_45 = arith.constant 9.99999974E-6 : f32
    %137 = vector.broadcast %cst_45 : f32 to vector<16x1xf32>
    %138 = arith.addf %134, %137 : vector<16x1xf32>
    %139 = math.rsqrt %138 : vector<16x1xf32>
    %140 = vector.broadcast %139 : vector<16x1xf32> to vector<16x128xf32>
    %141 = arith.mulf %136, %140 : vector<16x128xf32>
    %142 = vector.shape_cast %120 : vector<128xf32> to vector<1x128xf32>
    %143 = vector.broadcast %142 : vector<1x128xf32> to vector<16x128xf32>
    %144 = arith.mulf %141, %143 : vector<16x128xf32>
    %145 = vector.shape_cast %122 : vector<128xf32> to vector<1x128xf32>
    %146 = vector.broadcast %145 : vector<1x128xf32> to vector<16x128xf32>
    %147 = arith.addf %144, %146 : vector<16x128xf32>
    %148 = vector.shape_cast %147 : vector<16x128xf32> to vector<2x8x128xf32>
    %c0_46 = arith.constant 0 : index
    %c0_47 = arith.constant 0 : index
    %c0_48 = arith.constant 0 : index
    %149 = vector.load %arg10[%c0_46, %c0_47, %c0_48] : memref<2x8x128xf32, #tpu.memory_space<vmem>>, vector<2x8x128xf32>
    tpu.vector_store %arg10[%c0_46, %c0_47, %c0_48], %148 {strides = array<i32>} : memref<2x8x128xf32, #tpu.memory_space<vmem>>, vector<2x8x128xf32>,
    return
  }
  func.func @transform_0(%arg0: i32, %arg1: memref<2xf32, #tpu.memory_space<smem>>, %arg2: memref<2xf32, #tpu.memory_space<smem>>) -> (i32, i32, i32) {
    %c0_i32 = arith.constant 0 : i32
    %c0_i32_0 = arith.constant 0 : i32
    %c0_i32_1 = arith.constant 0 : i32
    return %arg0, %c0_i32, %c0_i32_0 : i32, i32, i32
  }
  func.func @transform_1(%arg0: i32, %arg1: memref<2xf32, #tpu.memory_space<smem>>, %arg2: memref<2xf32, #tpu.memory_space<smem>>) -> (i32, i32, i32) {
    %c0_i32 = arith.constant 0 : i32
    %c0_i32_0 = arith.constant 0 : i32
    %c0_i32_1 = arith.constant 0 : i32
    return %arg0, %c0_i32, %c0_i32_0 : i32, i32, i32
  }
  func.func @transform_2(%arg0: i32, %arg1: memref<2xf32, #tpu.memory_space<smem>>, %arg2: memref<2xf32, #tpu.memory_space<smem>>) -> (i32, i32) {
    %c0_i32 = arith.constant 0 : i32
    %c0_i32_0 = arith.constant 0 : i32
    %c0_i32_1 = arith.constant 0 : i32
    return %c0_i32, %c0_i32_0 : i32, i32
  }
  func.func @transform_3(%arg0: i32, %arg1: memref<2xf32, #tpu.memory_space<smem>>, %arg2: memref<2xf32, #tpu.memory_space<smem>>) -> (i32, i32) {
    %c0_i32 = arith.constant 0 : i32
    %c0_i32_0 = arith.constant 0 : i32
    %c0_i32_1 = arith.constant 0 : i32
    return %c0_i32, %c0_i32_0 : i32, i32
  }
  func.func @transform_4(%arg0: i32, %arg1: memref<2xf32, #tpu.memory_space<smem>>, %arg2: memref<2xf32, #tpu.memory_space<smem>>) -> (i32, i32) {
    %c0_i32 = arith.constant 0 : i32
    %c0_i32_0 = arith.constant 0 : i32
    %c0_i32_1 = arith.constant 0 : i32
    return %c0_i32, %c0_i32_0 : i32, i32
  }
  func.func @transform_5(%arg0: i32, %arg1: memref<2xf32, #tpu.memory_space<smem>>, %arg2: memref<2xf32, #tpu.memory_space<smem>>) -> (i32, i32) {
    %c0_i32 = arith.constant 0 : i32
    %c0_i32_0 = arith.constant 0 : i32
    %c0_i32_1 = arith.constant 0 : i32
    return %c0_i32, %c0_i32_0 : i32, i32
  }
  func.func @transform_6(%arg0: i32, %arg1: memref<2xf32, #tpu.memory_space<smem>>, %arg2: memref<2xf32, #tpu.memory_space<smem>>) -> (i32, i32) {
    %c0_i32 = arith.constant 0 : i32
    %c0_i32_0 = arith.constant 0 : i32
    %c0_i32_1 = arith.constant 0 : i32
    return %c0_i32, %c0_i32_0 : i32, i32
  }
  func.func @transform_7(%arg0: i32, %arg1: memref<2xf32, #tpu.memory_space<smem>>, %arg2: memref<2xf32, #tpu.memory_space<smem>>) -> (i32, i32, i32) {
    %c0_i32 = arith.constant 0 : i32
    %c0_i32_0 = arith.constant 0 : i32
    %c0_i32_1 = arith.constant 0 : i32
    return %arg0, %c0_i32, %c0_i32_0 : i32, i32, i32
  }
}

</mosaic_0001>

<bundles_post_ra>
// kernel: tpu_custom_call.1
= control target key start
LH: loop header
LB: loop body
LE: loop exit
PB: predicated region body
PF: predicated region fallthrough
CT: control target
= control target key end

     0   :  { %s1709_s30 = smov [#allocation3]   ;;  %s1903_s0 = inlined_call_operand.hbm [shape: f32[2], index: 0, kind: input, shape index: {}]   ;;  %s1904_s2 = inlined_call_operand.hbm [shape: f32[2,8,128], index: 2, kind: input, shape index: {}]   ;;  %s1905_s3 = inlined_call_operand.hbm [shape: f32[2,8,128], index: 3, kind: input, shape index: {}]   ;;  %s1906_s4 = inlined_call_operand.hbm [shape: bf16[128,384], index: 4, kind: input, shape index: {}]   ;;  %s1907_s5 = inlined_call_operand.hbm [shape: bf16[128,128], index: 5, kind: input, shape index: {}]   ;;  %s1908_s6 = inlined_call_operand.hbm [shape: bf16[128,256], index: 6, kind: input, shape index: {}]   ;;  %s1909_s7 = inlined_call_operand.hbm [shape: bf16[256,128], index: 7, kind: input, shape index: {}]   ;;  %s1910_s8 = inlined_call_operand.hbm [shape: f32[6,256], index: 8, kind: input, shape index: {}]   ;;  %s1911_s9 = inlined_call_operand.hbm [shape: f32[2,8,128], index: 9, kind: output, shape index: {}]   ;;  %s1912_s1 = inlined_call_operand.vmem [shape: f32[2], index: 1, kind: input, shape index: {}]  }
   0x1   :  { %15 = dma.hbm_to_smem %s1903_s0, 16, %s1709_s30, [#allocation2] }
   0x2   :  { %s16_s14 = sshll.u32 %s1912_s1, 4  ;;  %s17_s14 = int_to_ptr.vmem [resolvable:$true] %s16_s14 }
   0x3   :  { %s1525_s15 = scalar_lea.vmem %s17_s14, 16  ;;  %p1530_p1 = scmp.lt.s32.totalorder %s17_s14, %s17_s14 }
   0x4   :  { %p1526_p0 = scmp.ne.s32.totalorder %s17_s14, %s1525_s15  ;;  %p1531_p2 = scmp.lt.s32.totalorder %s1525_s15, %s1525_s15 }
   0x6   :  { %p1532_p3 = por %p1531_p2, %p1530_p1 }
   0x8   :  { %p1533_p4 = pnand %p1532_p3, %p1526_p0 }
   0xa   :  { %1536 = shalt.err (!%p1533_p4)  }
   0xb   :  { %s1710_s16 = smov [#allocation4]  }
   0xc   :  { %19 = dma.vmem_to_smem %s17_s14, 16, %s1710_s16, [#allocation2] }
   0xd   :  { %1697 = dma.done.wait [#allocation2], 32 }
   0xe   :  { %1698 = vsyncadd [#allocation2], 4294967264 }
   0xf   :  { %21 = sfence }
  0x10   :  { %22 = vsyncpa [#allocation6], 0 }
  0x11   :  { %23 = vsyncpa [#allocation9], 0 }
  0x12   :  { %24 = vsyncpa [#allocation12], 0 }
  0x13   :  { %25 = vsyncpa [#allocation15], 0 }
  0x14   :  { %26 = vsyncpa [#allocation7], 0  ;;  %s1711_s0 = smov [#allocation8]   ;;  %s1712_s17 = smov [#allocation11]  }
  0x15   :  { %s44_s1 = sshll.u32 %s1711_s0, 4  ;;  %s68_s18 = sshll.u32 %s1712_s17, 4  ;;  %s45_s1 = int_to_ptr.vmem [resolvable:$true] %s44_s1  ;;  %s69_s18 = int_to_ptr.vmem [resolvable:$true] %s68_s18 }
  0x16   :  { %s1545_s19 = scalar_lea.vmem %s45_s1, 256  ;;  %p1550_p6 = scmp.lt.s32.totalorder %s45_s1, %s45_s1 }
  0x17   :  { %p1546_p5 = scmp.ne.s32.totalorder %s45_s1, %s1545_s19  ;;  %p1551_p7 = scmp.lt.s32.totalorder %s1545_s19, %s1545_s19 }
  0x19   :  { %p1552_p8 = por %p1551_p7, %p1550_p6 }
  0x1b   :  { %p1553_p9 = pnand %p1552_p8, %p1546_p5 }
  0x1d   :  { %1556 = shalt.err (!%p1553_p9)
}
  0x1e   :  { %s1713_s20 = smov 128   ;;  %s1714_s21 = smov 8  }
  0x1f   :  { %50 = dma.hbm_to_vmem [thread:$0]  %s1905_s3, 256, %s45_s1, [#allocation9], %s1713_s20, %s1713_s20, %s1714_s21  }
  0x20   :  { %s1565_s24 = scalar_lea.vmem %s69_s18, 1024  ;;  %p1570_p11 = scmp.lt.s32.totalorder %s69_s18, %s69_s18 }
  0x21   :  { %p1566_p10 = scmp.ne.s32.totalorder %s69_s18, %s1565_s24  ;;  %p1571_p12 = scmp.lt.s32.totalorder %s1565_s24, %s1565_s24 }
  0x23   :  { %p1572_p13 = por %p1571_p12, %p1570_p11 }
  0x25   :  { %p1573_p0 = pnand %p1572_p13, %p1566_p10 }
  0x27   :  { %1576 = shalt.err (!%p1573_p0)
}
  0x28   :  { %s1715_s25 = smov 64   ;;  %s1716_s26 = smov 4  }
  0x29   :  { %74 = dma.hbm_to_vmem [thread:$0]  %s1907_s5, 1024, %s69_s18, [#allocation12], %s1715_s25, %s1715_s25, %s1716_s26  }
  0x2a   :  { %s1717_s29 = smov [#allocation14]   ;;  %s1718_s10 = smov [#allocation5]  }
  0x2b   :  { %s92_s30 = sshll.u32 %s1717_s29, 4  ;;  %s32_s11 = sshll.u32 %s1718_s10, 4  ;;  %s93_s30 = int_to_ptr.vmem [resolvable:$true] %s92_s30  ;;  %s33_s11 = int_to_ptr.vmem [resolvable:$true] %s32_s11 }
  0x2c   :  { %s1585_s3 = scalar_lea.vmem %s93_s30, 2048  ;;  %p1590_p2 = scmp.lt.s32.totalorder %s93_s30, %s93_s30 }
  0x2d   :  { %p1586_p1 = scmp.ne.s32.totalorder %s93_s30, %s1585_s3  ;;  %p1591_p3 = scmp.lt.s32.totalorder %s1585_s3, %s1585_s3 }
  0x2f   :  { %p1592_p4 = por %p1591_p3, %p1590_p2 }
  0x31   :  { %p1593_p5 = pnand %p1592_p4, %p1586_p1 }
  0x33   :  { %1596 = shalt.err (!%p1593_p5)
}
  0x34   :  { %98 = dma.hbm_to_vmem [thread:$0]  %s1909_s7, 2048, %s93_s30, [#allocation15], %s1715_s25, %s1715_s25, %s1716_s26  }
  0x35   :  { %s1605_s14 = scalar_lea.vmem %s33_s11, 256  ;;  %p1610_p7 = scmp.lt.s32.totalorder %s33_s11, %s33_s11 }
  0x36   :  { %p1606_p6 = scmp.ne.s32.totalorder %s33_s11, %s1605_s14  ;;  %p1611_p8 = scmp.lt.s32.totalorder %s1605_s14, %s1605_s14 }
  0x38   :  { %p1612_p9 = por %p1611_p8, %p1610_p7 }
  0x3a   :  { %p1613_p10 = pnand %p1612_p9, %p1606_p6 }
  0x3c   :  { %1616 = shalt.err (!%p1613_p10)
}
  0x3d   :  { %38 = dma.hbm_to_vmem [thread:$0]  %s1904_s2, 256, %s33_s11, [#allocation6], %s1713_s20, %s1713_s20, %s1714_s21  }
  0x3e   :  { %s1719_s16 = smov [#allocation10]  }
  0x3f   :  { %s56_s0 = sshll.u32 %s1719_s16, 4  ;;  %s57_s0 = int_to_ptr.vmem [resolvable:$true] %s56_s0 }
  0x40   :  { %s1625_s1 = scalar_lea.vmem %s57_s0, 3072  ;;  %p1630_p12 = scmp.lt.s32.totalorder %s57_s0, %s57_s0 }
  0x41   :  { %p1626_p11 = scmp.ne.s32.totalorder %s57_s0, %s1625_s1  ;;  %p1631_p13 = scmp.lt.s32.totalorder %s1625_s1, %s1625_s1 }
  0x43   :  { %p1632_p0 = por %p1631_p13, %p1630_p12 }
  0x45   :  { %p1633_p1 = pnand %p1632_p0, %p1626_p11 }
  0x47   :  { %1636 = shalt.err (!%p1633_p1)
}
  0x48   :  { %s1720_s7 = smov 192   ;;  %s1721_s17 = smov 12  }
  0x49   :  { %62 = dma.hbm_to_vmem [thread:$0]  %s1906_s4, 3072, %s57_s0, [#allocation9], %s1720_s7, %s1720_s7, %s1721_s17  }
  0x4a   :  { %s1722_s22 = smov [#allocation13]   ;;  %s1723_s2 = smov [#allocation16]  }
  0x4b   :  { %s80_s23 = sshll.u32 %s1722_s22, 4  ;;  %s105_s24 = sshll.u32 %s1723_s2, 4  ;;  %s81_s23 = int_to_ptr.vmem [resolvable:$true] %s80_s23  ;;  %s106_s24 = int_to_ptr.vmem [resolvable:$true] %s105_s24 }
  0x4c   :  { %s1645_s25 = scalar_lea.vmem %s81_s23, 2048  ;;  %p1650_p3 = scmp.lt.s32.totalorder %s81_s23, %s81_s23 }
  0x4d   :  { %p1646_p2 = scmp.ne.s32.totalorder %s81_s23, %s1645_s25  ;;  %p1651_p4 = scmp.lt.s32.totalorder %s1645_s25, %s1645_s25 }
  0x4f   :  { %p1652_p5 = por %p1651_p4, %p1650_p3 }
  0x51   :  { %p1653_p6 = pnand %p1652_p5, %p1646_p2 }
  0x53   :  { %1656 = shalt.err (!%p1653_p6)
}
  0x54   :  { %86 = dma.hbm_to_vmem [thread:$0]  %s1908_s6, 2048, %s81_s23, [#allocation12], %s1713_s20, %s1713_s20, %s1714_s21  }
  0x55   :  { %s1665_s4 = scalar_lea.vmem %s106_s24, 256  ;;  %p1670_p8 = scmp.lt.s32.totalorder %s106_s24, %s106_s24 }
  0x56   :  { %p1666_p7 = scmp.ne.s32.totalorder %s106_s24, %s1665_s4  ;;  %p1671_p9 = scmp.lt.s32.totalorder %s1665_s4, %s1665_s4 }
  0x58   :  { %p1672_p10 = por %p1671_p9, %p1670_p8 }
  0x5a   :  { %p1673_p11 = pnand %p1672_p10, %p1666_p7 }
  0x5c   :  { %1676 = shalt.err (!%p1673_p11)
}
  0x5d   :  { %108 = dma.hbm_to_vmem [thread:$0]  %s1910_s8, 256, %s106_s24, [#allocation15]  }
  0x5e   :  { %1699 = dma.done.wait [#allocation6], 256  }
  0x5f   :  { %1700 = vsyncadd [#allocation6], 4294967040 }
  0x60   :  { %1701 = dma.done.wait [#allocation9], 3328  }
  0x61   :  { %1702 = vsyncadd [#allocation9], 4294963968 }
  0x62   :  { %1703 = dma.done.wait [#allocation12], 3072  }
  0x63   :  { %1704 = vsyncadd [#allocation12], 4294964224 }
  0x64   :  { %1705 = dma.done.wait [#allocation15], 2304  }
  0x65   :  { %1706 = vsyncadd [#allocation15], 4294964992  ;;  %v137_v0 = vlaneseq  ;;  %s132_s6 = sld [smem:[#allocation3]]  ;;  %v1724_v1 = vmov 0.0   ;;  %v1413_v6 = vld [vmem:[#allocation10 + $0xac] ss:$12 sps:$4 sm:$0xff]  }
  0x66   :  { %1330 = vmatprep.subr.bf16.mxu1 %v1724_v1  ;;  %s1202_s30 = sld [smem:[#allocation3 + $0x1]]  ;;  %v1415_v8 = vld [vmem:[#allocation10 + $0xa8] ss:$12 sps:$4 sm:$0xff]   ;;  %v1725_v9 = vmov 0   ;;  %vm1726_vm1 = vmmov 0   ;;  %348 = vmatprep.subr.bf16.mxu0 %v1413_v6  ;;  %v177_v40 = vld [vmem:[#allocation5] sm:$0xff] }
  0x67   :  { %v1815_v2 = vshrl.u32 %v137_v0, 7  ;;  %s157_s10 = sld [smem:[#allocation4]]  ;;  %vm1817_vm0 = vcmp.lt.s32.totalorder %v137_v0, 1  ;;  %380 = vmatprep.mubr.bf16.mxu0 %v1725_v9  ;;  %1346 = vmatprep.mubr.msk.bf16.mxu1 %vm1726_vm1, %v1724_v1  ;;  %v1416_v12 = vld [vmem:[#allocation10 + $0xb0] ss:$12 sps:$4 sm:$0xff]   ;;  %v178_v43 = vld [vmem:[#allocation5 + $0x8] sm:$0xff] }
  0x68   :  { %s1203_s11 = sld [smem:[#allocation4 + $0x1]]  ;;  %349 = vmatpush1.bf16.msra.mxu0 %v1415_v8  ;;  %v1417_v15 = vld [vmem:[#allocation10 + $0x94] ss:$12 sps:$4 sm:$0xff]   ;;  %v1419_v16 = vld [vmem:[#allocation10 + $0x90] ss:$12 sps:$4 sm:$0xff]   ;;  %1331 = vmatpush3.bf16.msra.mxu1 %v1416_v12  ;;  %vm562_vm2 = vcmask 1043456  }
  0x69   :  { %v1822_v4 = vsub.s32 0, %v1815_v2  ;;  %v1420_v18 = vld [vmem:[#allocation10 + $0x98] ss:$12 sps:$4 sm:$0xff]   ;;  %350 = vmatprep.subr.bf16.mxu0 %v1417_v15  ;;  %v1421_v20 = vld [vmem:[#allocation10 + $0x7c] ss:$12 sps:$4 sm:$0xff]   ;;  %1332 = vmatprep.subr.bf16.mxu1 %v1724_v1  ;;  %v1843_v38 = vsub.s32 1, %v1815_v2 }
  0x6a   :  { %v1423_v21 = vld [vmem:[#allocation10 + $0x78] ss:$12 sps:$4 sm:$0xff]   ;;  %v1424_v22 = vld [vmem:[#allocation10 + $0x80] ss:$12 sps:$4 sm:$0xff]   ;;  %v1428_v25 = vld [vmem:[#allocation10 + $0x68] ss:$12 sps:$4 sm:$0xff]  }
  0x6b   :  { %v135_v5 = vstv %s132_s6  ;;  %v1425_v23 = vld [vmem:[#allocation10 + $0x64] ss:$12 sps:$4 sm:$0xff]   ;;  %v1427_v24 = vld [vmem:[#allocation10 + $0x60] ss:$12 sps:$4 sm:$0xff]   ;;  %v1431_v27 = vld [vmem:[#allocation10 + $0x48] ss:$12 sps:$4 sm:$0xff]  }
  0x6c   :  { %v136_v7 = vstv %s1202_s30  ;;  %351 = vmatpush1.bf16.msra.mxu0 %v1419_v16  ;;  %1333 = vmatpush3.bf16.msra.mxu1 %v1420_v18  ;;  %v1429_v26 = vld [vmem:[#allocation10 + $0x4c] ss:$12 sps:$4 sm:$0xff]   ;;  %v1432_v28 = vld [vmem:[#allocation10 + $0x50] ss:$12 sps:$4 sm:$0xff]   ;;  %v1433_v29 = vld [vmem:[#allocation10 + $0x34] ss:$12 sps:$4 sm:$0xff]  }
  0x6d   :  { %v141_v10 = vsel %vm1817_vm0, %v135_v5, %v136_v7  ;;  %v159_v11 = vstv %s157_s10  ;;  %352 = vmatprep.subr.bf16.mxu0 %v1421_v20  ;;  %1334 = vmatprep.subr.bf16.mxu1 %v1724_v1  ;;  %v1435_v30 = vld [vmem:[#allocation10 + $0x30] ss:$12 sps:$4 sm:$0xff]   ;;  %v1436_v31 = vld [vmem:[#allocation10 + $0x38] ss:$12 sps:$4 sm:$0xff]   ;;  %v1440_v34 = vld [vmem:[#allocation10 + $0x20] ss:$12 sps:$4 sm:$0xff]  }
  0x6e   :  { %v145_v13 = vrot.slane %v141_v10, %v1822_v4  ;;  %v160_v14 = vstv %s1203_s11  ;;  %v1437_v32 = vld [vmem:[#allocation10 + $0x1c] ss:$12 sps:$4 sm:$0xff]   ;;  %v1439_v33 = vld [vmem:[#allocation10 + $0x18] ss:$12 sps:$4 sm:$0xff]   ;;  %v1443_v36 = vld [vmem:[#allocation10] ss:$12 sps:$4 sm:$0xff]  }
  0x6f   :  { %v161_v17 = vsel %vm1817_vm0, %v159_v11, %v160_v14  ;;  %v1441_v35 = vld [vmem:[#allocation10 + $0x4] ss:$12 sps:$4 sm:$0xff]   ;;  %v1444_v37 = vld [vmem:[#allocation10 + $0x8] ss:$12 sps:$4 sm:$0xff]   ;;  %v182_v45 = vld [vmem:[#allocation8 + $0x8] sm:$0xff]  ;;  %vm534_vm3 = vcmask 64512  }
  0x70   :  { %147 = vbcast.lane.b32.xlu0 %v145_v13, 256  ;;  %v165_v19 = vrot.slane %v161_v17, %v1822_v4  ;;  %353 = vmatpush1.bf16.msra.mxu0 %v1423_v21  ;;  %v181_v44 = vld [vmem:[#allocation8] sm:$0xff]  ;;  %s1727_s8 = smov [#allocation17]  }
  0x71   :  { %1335 = vmatpush3.bf16.msra.mxu1 %v1424_v22  ;;  %354 = vmatprep.subr.bf16.mxu0 %v1425_v23  ;;  %s1187_s3 = sshll.u32 %s1727_s8, 4  ;;  %s1188_s3 = int_to_ptr.vmem [resolvable:$true] %s1187_s3 }
  0x72   :  { %1336 = vmatprep.subr.bf16.mxu1 %v1724_v1  ;;  %s1677_s12 = scalar_lea.vmem %s1188_s3, 256  ;;  %p1682_p13 = scmp.lt.s32.totalorder %s1188_s3, %s1188_s3 }
  0x73   :  { %p1678_p12 = scmp.ne.s32.totalorder %s1188_s3, %s1677_s12  ;;  %p1683_p0 = scmp.lt.s32.totalorder %s1677_s12, %s1677_s12 }
  0x74   :  { %167 = vbcast.lane.b32.xlu0 %v165_v19, 256  ;;  %355 = vmatpush1.bf16.msra.mxu0 %v1427_v24 }
  0x75   :  { %1337 = vmatpush3.bf16.msra.mxu1 %v1428_v25  ;;  %356 = vmatprep.subr.bf16.mxu0 %v1429_v26  ;;  %p1684_p1 = por %p1683_p0, %p1682_p13 }
  0x76   :  { %1338 = vmatprep.subr.bf16.mxu1 %v1724_v1 }
  0x77   :  { %p1685_p2 = pnand %p1684_p1, %p1678_p12 }
  0x78   :  { %357 = vmatpush1.bf16.msra.mxu0 %v1431_v27 }
  0x79   :  { %1339 = vmatpush3.bf16.msra.mxu1 %v1432_v28  ;;  %358 = vmatprep.subr.bf16.mxu0 %v1433_v29 }
  0x7a   :  { %1340 = vmatprep.subr.bf16.mxu1 %v1724_v1 }
  0x7c   :  { %359 = vmatpush1.bf16.msra.mxu0 %v1435_v30 }
  0x7d   :  { %1341 = vmatpush3.bf16.msra.mxu1 %v1436_v31  ;;  %360 = vmatprep.subr.bf16.mxu0 %v1437_v32  ;;  %v1445_v31 = vld [vmem:[#allocation11 + $0x38] sm:$0xff]   ;;  %v1446_v32 = vld [vmem:[#allocation11 + $0x30] sm:$0xff]  }
  0x7e   :  { %1342 = vmatprep.subr.bf16.mxu1 %v1724_v1 }
  0x80   :  { %361 = vmatpush1.bf16.msra.mxu0 %v1439_v33  ;;  %v1447_v33 = vld [vmem:[#allocation11 + $0x28] sm:$0xff]  }
  0x81   :  { %1343 = vmatpush3.bf16.msra.mxu1 %v1440_v34  ;;  %362 = vmatprep.subr.bf16.mxu0 %v1441_v35  ;;  %v1448_v34 = vld [vmem:[#allocation11 + $0x20] sm:$0xff]   ;;  %v1449_v35 = vld [vmem:[#allocation11 + $0x18] sm:$0xff]  }
  0x82   :  { %1344 = vmatprep.subr.bf16.mxu1 %v1724_v1 }
  0x84   :  { %363 = vmatpush1.bf16.msra.mxu0 %v1443_v36 }
  0x85   :  { %1345 = vmatpush3.bf16.msra.mxu1 %v1444_v37  ;;  %1374 = vmatprep.subr.bf16.mxu0 %v1724_v1 }
  0x86   :  { %1350 = vmatprep.subr.bf16.mxu1 %v1724_v1 }
  0xe2   :  { %v148_v39 = vpop.permute.xlu0 %147 }
  0xe3   :  { %v152_v41 = vrot.slane %v148_v39, %v1822_v4  ;;  %v156_v42 = vrot.slane %v148_v39, %v1843_v38 }
  0xe5   :  { %v179_v49 = vmul.f32 %v177_v40, %v152_v41  ;;  %v180_v50 = vmul.f32 %v178_v43, %v156_v42 }
  0xe6   :  { %v168_v46 = vpop.permute.xlu0 %167 }
  0xe7   :  { %v172_v47 = vrot.slane %v168_v46, %v1822_v4  ;;  %v176_v48 = vrot.slane %v168_v46, %v1843_v38  ;;  %v1451_v46 = vld [vmem:[#allocation11 + $0x8] sm:$0xff]  }
  0xe9   :  { %v183_v51 = vmul.f32 %v181_v44, %v172_v47  ;;  %v184_v52 = vmul.f32 %v182_v45, %v176_v48  ;;  %v1450_v45 = vld [vmem:[#allocation11 + $0x10] sm:$0xff]   ;;  %v1452_v47 = vld [vmem:[#allocation11] sm:$0xff]  }
  0xeb   :  { %v1849_v53 = vadd.f32 %v183_v51, %v179_v49  ;;  %v1851_v54 = vadd.f32 %v184_v52, %v180_v50 }
  0xed   :  { %v187_v55 = vpack.c.bf16 %v1851_v54, %v1849_v53 }
  0xef   :  { %381 = vmatmul.mubr.bf16.vlgmr.msra.gmra.mxu0 %v187_v55  ;;  %1347 = vmatmul.mubr.bf16.vlgmr.msra.gmra.mxu1 %v187_v55 }
  0xf0   :  { %1352 = vmatprep.mubr.msk.bf16.mxu1 %vm1726_vm1, %v1724_v1  ;;  %1390 = vmatprep.mubr.msk.bf16.mxu0 %vm1726_vm1, %v1724_v1 }
  0xf1   :  { %1375 = vmatpush3.bf16.msra.mxu0 %v1445_v31 }
  0xf2   :  { %1376 = vmatprep.subr.bf16.mxu0 %v1724_v1 }
  0xf5   :  { %1377 = vmatpush3.bf16.msra.mxu0 %v1446_v32  ;;  %v758_v32 = vld [vmem:[#allocation16] ss:$0 sm:$0xff] }
  0xf6   :  { %1378 = vmatprep.subr.bf16.mxu0 %v1724_v1 }
  0xf9   :  { %1379 = vmatpush3.bf16.msra.mxu0 %v1447_v33 }
  0xfa   :  { %1380 = vmatprep.subr.bf16.mxu0 %v1724_v1 }
  0xfd   :  { %1381 = vmatpush3.bf16.msra.mxu0 %v1448_v34 }
  0xfe   :  { %1382 = vmatprep.subr.bf16.mxu0 %v1724_v1 }
 0x101   :  { %1383 = vmatpush3.bf16.msra.mxu0 %v1449_v35 }
 0x102   :  { %1384 = vmatprep.subr.bf16.mxu0 %v1724_v1 }
 0x105   :  { %1385 = vmatpush3.bf16.msra.mxu0 %v1450_v45  ;;  %v1480_v45 = vld [vmem:[#allocation14 + $0x30] sm:$0xff]  }
 0x106   :  { %1386 = vmatprep.subr.bf16.mxu0 %v1724_v1 }
 0x109   :  { %1387 = vmatpush3.bf16.msra.mxu0 %v1451_v46  ;;  %v1481_v46 = vld [vmem:[#allocation14 + $0x68] sm:$0xff]  }
 0x10a   :  { %1388 = vmatprep.subr.bf16.mxu0 %v1724_v1 }
 0x10d   :  { %1389 = vmatpush3.bf16.msra.mxu0 %v1452_v47  ;;  %v1482_v47 = vld [vmem:[#allocation14 + $0x28] sm:$0xff]  }
 0x1af   :  { %v382_v56 = vpop.f32.mrf.mxu0  ;;  %v425_v57 = vpop.f32.mrf.mxu1 }
 0x1b0   :  { %v1276_v5 = vpack.c.bf16 %v382_v56, %v382_v56  ;;  %v1280_v7 = vpack.c.bf16 %v425_v57, %v425_v57 }
 0x1b1   :  { %v384_v58 = vpop.f32.mrf.mxu0  ;;  %v1348_v59 = vpop.f32.mrf.mxu1 }
 0x1b2   :  { %v1278_v60 = vpack.c.bf16 %v384_v58, %v384_v58  ;;  %v564_v10 = vsel %vm562_vm2, %v1280_v7, 0 }
 0x1b3   :  { %v386_v61 = vpop.f32.mrf.mxu0  ;;  %v428_v62 = vpop.f32.mrf.mxu1 }
 0x1b4   :  { %v1281_v63 = vpack.c.bf16 %v428_v62, %v428_v62  ;;  %1351 = vmatpush3.bf16.xpose.msra.mxu1 %v1278_v60  ;;  %v1277_v8 = vpack.c.bf16 %v386_v61, %v386_v61 }
 0x1b5   :  { %v1349_v0 = vpop.f32.mrf.mxu1  ;;  %1356 = vmatprep.subr.bf16.mxu1 %v1724_v1  ;;  %v388_v3 = vpop.f32.mrf.mxu0 }
 0x1b6   :  { %v1860_v2 = vsel %vm562_vm2, %v1281_v63, 0  ;;  %v1279_v6 = vpack.c.bf16 %v388_v3, %v388_v3  ;;  %v1453_v63 = vld [vmem:[#allocation13 + $0x70] ss:$8 sps:$4 sm:$0xff]   ;;  %v1455_v0 = vld [vmem:[#allocation13 + $0x74] ss:$8 sps:$4 sm:$0xff]  }
 0x1bb   :  { %1353 = vmatmul.mubr.bf16.vlgmr.msra.gmra.mxu1 %v1276_v5 }
 0x1bc   :  { %1357 = vmatpush3.bf16.xpose.msra.mxu1 %v1279_v6  ;;  %1358 = vmatprep.mubr.msk.bf16.mxu1 %vm1726_vm1, %v1724_v1 }
 0x1bd   :  { %1362 = vmatprep.subr.bf16.mxu1 %v1724_v1 }
 0x1c3   :  { %1359 = vmatmul.mubr.bf16.vlgmr.msra.gmra.mxu1 %v1277_v8 }
 0x1c4   :  { %1363 = vmatpush3.bf16.msra.mxu1 %v564_v10  ;;  %1364 = vmatprep.mubr.msk.bf16.mxu1 %vm1726_vm1, %v1724_v1 }
 0x1c5   :  { %1368 = vmatprep.subr.bf16.mxu1 %v1724_v1 }
 0x27b   :  { %v488_v11 = vpop.f32.mrf.mxu1 }
 0x27c   :  { %v535_v12 = vsel %vm534_vm3, %v488_v11, -inf }
 0x27d   :  { %536 = vmax.xlane.f32.xlu1 %v535_v12  ;;  %v1354_v13 = vpop.f32.mrf.mxu1  ;;  %v1456_v12 = vld [vmem:[#allocation13 + $0x60] ss:$8 sps:$4 sm:$0xff]  }
 0x27e   :  { %v1459_v13 = vld [vmem:[#allocation13 + $0x50] ss:$8 sps:$4 sm:$0xff]  }
 0x27f   :  { %v491_v14 = vpop.f32.mrf.mxu1 }
 0x280   :  { %v1462_v14 = vld [vmem:[#allocation13 + $0x40] ss:$8 sps:$4 sm:$0xff]  }
 0x281   :  { %v1355_v15 = vpop.f32.mrf.mxu1 }
 0x282   :  { %v1464_v15 = vld [vmem:[#allocation13 + $0x44] ss:$8 sps:$4 sm:$0xff]  }
 0x283   :  { %v528_v16 = vpop.f32.mrf.mxu1 }
 0x284   :  { %v538_v17 = vsel %vm534_vm3, %v528_v16, -inf }
 0x285   :  { %539 = vmax.xlane.f32.xlu1 %v538_v17  ;;  %v1360_v18 = vpop.f32.mrf.mxu1  ;;  %v1465_v17 = vld [vmem:[#allocation13 + $0x30] ss:$8 sps:$4 sm:$0xff]  }
 0x286   :  { %v1470_v18 = vld [vmem:[#allocation13 + $0x24] ss:$8 sps:$4 sm:$0xff]  }
 0x287   :  { %v531_v19 = vpop.f32.mrf.mxu1 }
 0x288   :  { %v1468_v19 = vld [vmem:[#allocation13 + $0x20] ss:$8 sps:$4 sm:$0xff]  }
 0x289   :  { %v1361_v20 = vpop.f32.mrf.mxu1 }
 0x28a   :  { %v1473_v20 = vld [vmem:[#allocation13 + $0x14] ss:$8 sps:$4 sm:$0xff]  }
 0x306   :  { %v537_v21 = vpop.xlane.xlu1 %536 }
 0x307   :  { %v541_v22 = vsub.f32 %v488_v11, %v537_v21  ;;  %v1458_v11 = vld [vmem:[#allocation13 + $0x64] ss:$8 sps:$4 sm:$0xff]   ;;  %v1471_v21 = vld [vmem:[#allocation13 + $0x10] ss:$8 sps:$4 sm:$0xff]  }
 0x309   :  { %v543_v23 = vmul.f32 1.442695, %v541_v22  ;;  %v1476_v22 = vld [vmem:[#allocation13 + $0x4] ss:$8 sps:$4 sm:$0xff]  }
 0x30b   :  { %1493 = vpow2.f32 %v543_v23  ;;  %v1474_v23 = vld [vmem:[#allocation13] ss:$8 sps:$4 sm:$0xff]  }
 0x30e   :  { %v540_v24 = vpop.xlane.xlu1 %539 }
 0x30f   :  { %v542_v25 = vsub.f32 %v528_v16, %v540_v24  ;;  %v1467_v16 = vld [vmem:[#allocation13 + $0x34] ss:$8 sps:$4 sm:$0xff]  }
 0x311   :  { %v545_v26 = vmul.f32 1.442695, %v542_v25 }
 0x313   :  { %1495 = vpow2.f32 %v545_v26 }
 0x318   :  { %v1494_v27 = vpop.eup %1493 }
 0x319   :  { %v547_v28 = vsel %vm534_vm3, %v1494_v27, 0.0 }
 0x31a   :  { %548 = vadd.xlane.f32.xlu0 %v547_v28 }
 0x320   :  { %v1496_v29 = vpop.eup %1495 }
 0x321   :  { %v550_v30 = vsel %vm534_vm3, %v1496_v29, 0.0 }
 0x322   :  { %551 = vadd.xlane.f32.xlu1 %v550_v30 }
 0x3a3   :  { %v549_v36 = vpop.xlane.xlu0 %548 }
 0x3a4   :  { %1497 = vrcp.f32 %v549_v36  ;;  %v759_v36 = vld [vmem:[#allocation16 + $0x1] ss:$0 sm:$0xff] }
 0x3ab   :  { %v552_v37 = vpop.xlane.xlu1 %551 }
 0x3ac   :  { %1499 = vrcp.f32 %v552_v37 }
 0x3b1   :  { %v1498_v39 = vpop.eup %1497 }
 0x3b2   :  { %v555_v40 = vmul.f32 %v1498_v39, %v1494_v27 }
 0x3b4   :  { %v557_v41 = vpack.c.bf16 %v555_v40, %v555_v40 }
 0x3b6   :  { %1365 = vmatmul.mubr.msk.bf16.vlgmr.msra.gmra.mxu1 %vm534_vm3, %v557_v41 }
 0x3b7   :  { %1369 = vmatpush3.bf16.msra.mxu1 %v1860_v2  ;;  %1370 = vmatprep.mubr.msk.bf16.mxu1 %vm1726_vm1, %v1724_v1 }
 0x3b8   :  { %900 = vmatprep.subr.bf16.mxu1 %v1455_v0 }
 0x3b9   :  { %v1500_v42 = vpop.eup %1499 }
 0x3ba   :  { %v556_v43 = vmul.f32 %v1500_v42, %v1496_v29  ;;  %v1477_v42 = vld [vmem:[#allocation14 + $0x78] sm:$0xff]  }
 0x3bb   :  { %1308 = vmatprep.subr.bf16.mxu0 %v1477_v42 }
 0x3bc   :  { %v558_v44 = vpack.c.bf16 %v556_v43, %v556_v43  ;;  %v1478_v43 = vld [vmem:[#allocation14 + $0x38] sm:$0xff]  }
 0x3be   :  { %1371 = vmatmul.mubr.msk.bf16.vlgmr.msra.gmra.mxu1 %vm534_vm3, %v558_v44  ;;  %v1479_v44 = vld [vmem:[#allocation14 + $0x70] sm:$0xff]  }
 0x3bf   :  { %932 = vmatprep.mubr.bf16.mxu1 %v1725_v9  ;;  %901 = vmatpush1.bf16.msra.mxu1 %v1453_v63 }
 0x3c0   :  { %902 = vmatprep.subr.bf16.mxu1 %v1458_v11 }
 0x3c3   :  { %903 = vmatpush1.bf16.msra.mxu1 %v1456_v12 }
 0x476   :  { %v600_v48 = vpop.f32.mrf.mxu1 }
 0x478   :  { %v1366_v49 = vpop.f32.mrf.mxu1 }
 0x479   :  { %v1484_v49 = vld [vmem:[#allocation14 + $0x20] sm:$0xff]  }
 0x47a   :  { %v603_v50 = vpop.f32.mrf.mxu1 }
 0x47b   :  { %v1485_v50 = vld [vmem:[#allocation14 + $0x58] sm:$0xff]  }
 0x47c   :  { %v1367_v51 = vpop.f32.mrf.mxu1 }
 0x47d   :  { %v1486_v51 = vld [vmem:[#allocation14 + $0x18] sm:$0xff]  }
 0x47e   :  { %v646_v52 = vpop.f32.mrf.mxu1 }
 0x47f   :  { %v652_v55 = vpack.c.bf16 %v646_v52, %v600_v48  ;;  %v1483_v48 = vld [vmem:[#allocation14 + $0x60] sm:$0xff]   ;;  %v1487_v52 = vld [vmem:[#allocation14 + $0x50] sm:$0xff]  }
 0x480   :  { %v1372_v56 = vpop.f32.mrf.mxu1 }
 0x481   :  { %1391 = vmatmul.mubr.bf16.vlgmr.msra.gmra.mxu0 %v652_v55  ;;  %v1488_v55 = vld [vmem:[#allocation14 + $0x10] sm:$0xff]   ;;  %v1489_v56 = vld [vmem:[#allocation14 + $0x48] sm:$0xff]  }
 0x482   :  { %v649_v57 = vpop.f32.mrf.mxu1  ;;  %1309 = vmatpush3.bf16.msra.mxu0 %v1478_v43 }
 0x483   :  { %1310 = vmatprep.subr.bf16.mxu0 %v1479_v44  ;;  %v1490_v57 = vld [vmem:[#allocation14 + $0x8] sm:$0xff]  }
 0x484   :  { %v1373_v9 = vpop.f32.mrf.mxu1 }
 0x485   :  { %v1491_v9 = vld [vmem:[#allocation14 + $0x40] sm:$0xff]  }
 0x486   :  { %1311 = vmatpush3.bf16.msra.mxu0 %v1480_v45 }
 0x487   :  { %1312 = vmatprep.subr.bf16.mxu0 %v1481_v46  ;;  %v791_v46 = vld [vmem:[#allocation16 + $0x3] ss:$0 sm:$0xff] }
 0x48a   :  { %1313 = vmatpush3.bf16.msra.mxu0 %v1482_v47 }
 0x48b   :  { %1314 = vmatprep.subr.bf16.mxu0 %v1483_v48 }
 0x48e   :  { %1315 = vmatpush3.bf16.msra.mxu0 %v1484_v49 }
 0x48f   :  { %1316 = vmatprep.subr.bf16.mxu0 %v1485_v50 }
 0x492   :  { %1317 = vmatpush3.bf16.msra.mxu0 %v1486_v51 }
 0x493   :  { %1318 = vmatprep.subr.bf16.mxu0 %v1487_v52 }
 0x496   :  { %1319 = vmatpush3.bf16.msra.mxu0 %v1488_v55 }
 0x497   :  { %1320 = vmatprep.subr.bf16.mxu0 %v1489_v56 }
 0x49a   :  { %1321 = vmatpush3.bf16.msra.mxu0 %v1490_v57 }
 0x49b   :  { %1322 = vmatprep.subr.bf16.mxu0 %v1491_v9 }
 0x541   :  { %v751_v58 = vpop.f32.mrf.mxu0 }
 0x542   :  { %v760_v59 = vadd.f32 %v751_v58, %v1849_v53  ;;  %v1492_v58 = vld [vmem:[#allocation14] sm:$0xff]  }
 0x543   :  { %v1392_v60 = vpop.f32.mrf.mxu0  ;;  %1323 = vmatpush3.bf16.msra.mxu0 %v1492_v58 }
 0x544   :  { %762 = vadd.xlane.f32.xlu1 %v760_v59 }
 0x545   :  { %v754_v61 = vpop.f32.mrf.mxu0 }
 0x546   :  { %v761_v1 = vadd.f32 %v754_v61, %v1851_v54  ;;  %v1461_v54 = vld [vmem:[#allocation13 + $0x54] ss:$8 sps:$4 sm:$0xff]  }
 0x547   :  { %v1393_v62 = vpop.f32.mrf.mxu0  ;;  %904 = vmatprep.subr.bf16.mxu1 %v1461_v54 }
 0x548   :  { %764 = vadd.xlane.f32.xlu1 %v761_v1  ;;  %905 = vmatpush1.bf16.msra.mxu1 %v1459_v13 }
 0x549   :  { %906 = vmatprep.subr.bf16.mxu1 %v1464_v15 }
 0x54c   :  { %907 = vmatpush1.bf16.msra.mxu1 %v1462_v14 }
 0x54d   :  { %908 = vmatprep.subr.bf16.mxu1 %v1467_v16 }
 0x550   :  { %909 = vmatpush1.bf16.msra.mxu1 %v1465_v17 }
 0x551   :  { %910 = vmatprep.subr.bf16.mxu1 %v1470_v18 }
 0x554   :  { %911 = vmatpush1.bf16.msra.mxu1 %v1468_v19 }
 0x555   :  { %912 = vmatprep.subr.bf16.mxu1 %v1473_v20 }
 0x558   :  { %913 = vmatpush1.bf16.msra.mxu1 %v1471_v21 }
 0x559   :  { %914 = vmatprep.subr.bf16.mxu1 %v1476_v22 }
 0x55c   :  { %915 = vmatpush1.bf16.msra.mxu1 %v1474_v23 }
 0x5cd   :  { %v763_v2 = vpop.xlane.xlu1 %762 }
 0x5ce   :  { %v767_v3 = vmul.f32 0.0078125, %v763_v2 }
 0x5d0   :  { %v769_v5 = vsub.f32 %v760_v59, %v767_v3  ;;  %v790_v59 = vld [vmem:[#allocation16 + $0x2] ss:$8 sm:$0x3] }
 0x5d1   :  { %v765_v6 = vpop.xlane.xlu1 %764  ;;  %v813_v60 = vrot.slane %v790_v59, %v1822_v4  ;;  %v817_v61 = vrot.slane %v790_v59, %v1843_v38 }
 0x5d2   :  { %v768_v7 = vmul.f32 0.0078125, %v765_v6  ;;  %v771_v8 = vmul.f32 %v769_v5, %v769_v5 }
 0x5d4   :  { %v770_v10 = vsub.f32 %v761_v1, %v768_v7  ;;  %773 = vadd.xlane.f32.xlu1 %v771_v8 }
 0x5d6   :  { %v772_v53 = vmul.f32 %v770_v10, %v770_v10 }
 0x5d8   :  { %775 = vadd.xlane.f32.xlu1 %v772_v53 }
 0x65d   :  { %v774_v24 = vpop.xlane.xlu1 %773 }
 0x65e   :  { %v777_v25 = vmul.f32 0.0078125, %v774_v24 }
 0x660   :  { %v779_v26 = vadd.f32 1e-05, %v777_v25 }
 0x661   :  { %v776_v27 = vpop.xlane.xlu1 %775 }
 0x662   :  { %1501 = vrsqrt.f32 %v779_v26  ;;  %v778_v28 = vmul.f32 0.0078125, %v776_v27 }
 0x664   :  { %v780_v29 = vadd.f32 1e-05, %v778_v28 }
 0x666   :  { %1503 = vrsqrt.f32 %v780_v29 }
 0x66f   :  { %v1502_v30 = vpop.eup %1501 }
 0x670   :  { %v783_v31 = vmul.f32 %v1502_v30, %v769_v5 }
 0x672   :  { %v785_v35 = vmul.f32 %v783_v31, %v758_v32 }
 0x673   :  { %v1504_v33 = vpop.eup %1503 }
 0x674   :  { %v784_v34 = vmul.f32 %v1504_v33, %v770_v10  ;;  %v1887_v39 = vadd.f32 %v785_v35, %v759_v36 }
 0x676   :  { %v786_v37 = vmul.f32 %v784_v34, %v758_v32 }
 0x678   :  { %v1889_v40 = vadd.f32 %v786_v37, %v759_v36 }
 0x67a   :  { %v792_v41 = vpack.c.bf16 %v1889_v40, %v1887_v39 }
 0x67c   :  { %933 = vmatmul.mubr.bf16.vlgmr.msra.gmra.mxu1 %v792_v41 }
 0x73c   :  { %v934_v1 = vpop.f32.mrf.mxu1 }
 0x73d   :  { %v935_v62 = vadd.f32 %v934_v1, %v813_v60 }
 0x73e   :  { %v936_v63 = vpop.f32.mrf.mxu1 }
 0x73f   :  { %v943_v0 = vmul.f32 %v935_v62, %v935_v62  ;;  %v937_v2 = vadd.f32 %v936_v63, %v817_v61 }
 0x740   :  { %v938_v3 = vpop.f32.mrf.mxu1 }
 0x741   :  { %v947_v5 = vmul.f32 %v943_v0, %v935_v62  ;;  %v944_v6 = vmul.f32 %v937_v2, %v937_v2  ;;  %v939_v7 = vadd.f32 %v938_v3, %v813_v60 }
 0x742   :  { %v940_v8 = vpop.f32.mrf.mxu1 }
 0x743   :  { %v951_v10 = vmul.f32 0.044715, %v947_v5  ;;  %v948_v53 = vmul.f32 %v944_v6, %v937_v2  ;;  %v945_v11 = vmul.f32 %v939_v7, %v939_v7  ;;  %v941_v12 = vadd.f32 %v940_v8, %v817_v61 }
 0x745   :  { %v955_v54 = vadd.f32 %v951_v10, %v935_v62  ;;  %v952_v13 = vmul.f32 0.044715, %v948_v53  ;;  %v949_v14 = vmul.f32 %v945_v11, %v939_v7  ;;  %v946_v4 = vmul.f32 %v941_v12, %v941_v12  ;;  %v1151_v10 = vld [vmem:[#allocation16 + $0x5] ss:$0 sm:$0xff] }
 0x747   :  { %v959_v15 = vmul.f32 0.7978846, %v955_v54  ;;  %v956_v38 = vadd.f32 %v952_v13, %v937_v2  ;;  %v953_v16 = vmul.f32 0.044715, %v949_v14  ;;  %v950_v17 = vmul.f32 %v946_v4, %v941_v12 }
 0x749   :  { %v960_v18 = vmul.f32 0.7978846, %v956_v38  ;;  %v957_v19 = vadd.f32 %v953_v16, %v939_v7  ;;  %v954_v20 = vmul.f32 0.044715, %v950_v17  ;;  %1505 = vtanh.f32 %v959_v15 }
 0x74b   :  { %1507 = vtanh.f32 %v960_v18  ;;  %v961_v21 = vmul.f32 0.7978846, %v957_v19  ;;  %v958_v22 = vadd.f32 %v954_v20, %v941_v12 }
 0x74d   :  { %1509 = vtanh.f32 %v961_v21  ;;  %v962_v23 = vmul.f32 0.7978846, %v958_v22 }
 0x74f   :  { %1511 = vtanh.f32 %v962_v23 }
 0x756   :  { %v1506_v24 = vpop.eup %1505 }
 0x757   :  { %v967_v28 = vadd.f32 1.0, %v1506_v24 }
 0x758   :  { %v1508_v25 = vpop.eup %1507 }
 0x759   :  { %v968_v26 = vadd.f32 1.0, %v1508_v25  ;;  %v971_v34 = vmul.f32 0.5, %v967_v28 }
 0x75a   :  { %v1510_v27 = vpop.eup %1509 }
 0x75b   :  { %v969_v29 = vadd.f32 1.0, %v1510_v27  ;;  %v972_v33 = vmul.f32 0.5, %v968_v26  ;;  %v975_v42 = vmul.f32 %v971_v34, %v935_v62 }
 0x75c   :  { %v1512_v30 = vpop.eup %1511 }
 0x75d   :  { %v973_v31 = vmul.f32 0.5, %v969_v29  ;;  %v970_v32 = vadd.f32 1.0, %v1512_v30  ;;  %v976_v37 = vmul.f32 %v972_v33, %v937_v2 }
 0x75f   :  { %v974_v35 = vmul.f32 0.5, %v970_v32  ;;  %v977_v36 = vmul.f32 %v973_v31, %v939_v7  ;;  %v1150_v7 = vld [vmem:[#allocation16 + $0x4] ss:$0 sm:$0xff] }
 0x761   :  { %v978_v41 = vmul.f32 %v974_v35, %v941_v12  ;;  %v979_v44 = vpack.c.bf16 %v977_v36, %v975_v42 }
 0x763   :  { %v980_v43 = vpack.c.bf16 %v978_v41, %v976_v37 }
 0x765   :  { %1141 = vmatprep.mubr.bf16.mxu0 %v980_v43 }
 0x766   :  { %1142 = vmatmul.mubr.bf16.vlgmr.msra.gmra.mxu0 %v979_v44 }
 0x826   :  { %v1324_v45 = vpop.f32.mrf.mxu0 }
 0x828   :  { %v1325_v47 = vpop.f32.mrf.mxu0 }
 0x829   :  { %v1326_v48 = vadd.f32 %v1325_v47, %v1324_v45 }
 0x82a   :  { %v1327_v49 = vpop.f32.mrf.mxu0 }
 0x82b   :  { %v1144_v50 = vadd.f32 %v1326_v48, %v791_v46 }
 0x82c   :  { %v1328_v51 = vpop.f32.mrf.mxu0 }
 0x82d   :  { %v1329_v52 = vadd.f32 %v1328_v51, %v1327_v49  ;;  %v1152_v55 = vadd.f32 %v1144_v50, %v1887_v39 }
 0x82f   :  { %v1147_v56 = vadd.f32 %v1329_v52, %v791_v46  ;;  %1154 = vadd.xlane.f32.xlu1 %v1152_v55 }
 0x831   :  { %v1153_v57 = vadd.f32 %v1147_v56, %v1889_v40 }
 0x833   :  { %1156 = vadd.xlane.f32.xlu1 %v1153_v57 }
 0x8b8   :  { %v1155_v9 = vpop.xlane.xlu1 %1154 }
 0x8b9   :  { %v1158_v58 = vmul.f32 0.0078125, %v1155_v9 }
 0x8bb   :  { %v1160_v59 = vsub.f32 %v1152_v55, %v1158_v58 }
 0x8bc   :  { %v1157_v60 = vpop.xlane.xlu1 %1156 }
 0x8bd   :  { %v1159_v61 = vmul.f32 0.0078125, %v1157_v60  ;;  %v1162_v1 = vmul.f32 %v1160_v59, %v1160_v59 }
 0x8bf   :  { %v1161_v62 = vsub.f32 %v1153_v57, %v1159_v61  ;;  %1164 = vadd.xlane.f32.xlu1 %v1162_v1 }
 0x8c1   :  { %v1163_v63 = vmul.f32 %v1161_v62, %v1161_v62 }
 0x8c3   :  { %1166 = vadd.xlane.f32.xlu0 %v1163_v63 }
 0x948   :  { %v1165_v0 = vpop.xlane.xlu1 %1164 }
 0x949   :  { %v1168_v2 = vmul.f32 0.0078125, %v1165_v0 }
 0x94b   :  { %v1170_v3 = vadd.f32 1e-05, %v1168_v2 }
 0x94c   :  { %v1167_v5 = vpop.xlane.xlu0 %1166 }
 0x94d   :  { %1513 = vrsqrt.f32 %v1170_v3  ;;  %v1169_v39 = vmul.f32 0.0078125, %v1167_v5 }
 0x94f   :  { %v1171_v6 = vadd.f32 1e-05, %v1169_v39 }
 0x951   :  { %1515 = vrsqrt.f32 %v1171_v6 }
 0x95a   :  { %v1514_v40 = vpop.eup %1513 }
 0x95b   :  { %v1174_v8 = vmul.f32 %v1514_v40, %v1160_v59 }
 0x95d   :  { %v1176_v53 = vmul.f32 %v1174_v8, %v1150_v7 }
 0x95e   :  { %v1516_v11 = vpop.eup %1515 }
 0x95f   :  { %v1175_v12 = vmul.f32 %v1516_v11, %v1161_v62  ;;  %v1178_v54 = vadd.f32 %v1176_v53, %v1151_v10 }
 0x961   :  { %v1177_v13 = vmul.f32 %v1175_v12, %v1150_v7  ;;  %1180 = vst [vmem:[#allocation17] sm:$0xff] %v1178_v54 }
 0x963   :  { %v1179_v14 = vadd.f32 %v1177_v13, %v1151_v10 }
 0x965   :  { %1181 = vst [vmem:[#allocation17 + $0x8] sm:$0xff] %v1179_v14 }
 0x966   :  { %1688 = shalt.err (!%p1685_p2)
}
 0x967   :  { %1193 = dma.vmem_to_hbm [thread:$0]  %s1188_s3, 256, %s1911_s9, [#allocation7], %s1713_s20, %s1713_s20, %s1714_s21  }
 0x968   :  { %1707 = dma.done.wait [#allocation7], 256  }
 0x969   :  { %1708 = vsyncadd [#allocation7], 4294967040 }
 0x96a   :  { %1197 = vsyncpa [#allocation6], 1 }
 0x96b   :  { %1198 = vsyncpa [#allocation9], 1 }
 0x96c   :  { %1199 = vsyncpa [#allocation12], 1 }
 0x96d   :  { %1200 = vsyncpa [#allocation15], 1 }
 0x96e   :  { %1201 = vsyncpa [#allocation7], 1 }

</bundles_post_ra>
